<compile_context>
chip_gen: v6e
topology: v6e:2x2x1
jax: 0.10.0
libtpu: 0.0.40
codegen_flags: <defaults>
</compile_context>

<pallas_src>
import functools

import jax
import jax.numpy as jnp
from jax.experimental import pallas as pl
from jax.experimental.pallas import tpu as pltpu


_LANE = 128
_SUBLANE = 8


def _round_up(x, m):
    return ((x + m - 1) // m) * m


def _default_num_partials():
    # Only v7x has 2 TensorCores per chip that a leading "parallel" grid axis
    # can shard the reduction across; on single-TC v5e/v6e a second partial is
    # pure per-step overhead + extra lane padding (perf-review item).
    try:
        kind = jax.devices()[0].device_kind.lower()
    except Exception:
        return 1
    return 2 if ("v7" in kind or "7x" in kind) else 1


def _yolo_loss_kernel(pred_ref, tgt_ref, out_ref, *, inv_S, l_coord, l_noobj):
    """Processes one (30, 8, tile) channels-major block; accumulates the loss."""
    step = pl.program_id(1)

    @pl.when(step == 0)
    def _init():
        out_ref[...] = jnp.zeros_like(out_ref)

    def pch(k):   # predicted channel k -> dense (8, tile) f32 slab
        return pred_ref[k].astype(jnp.float32)

    def tch(k):   # target channel k -> dense (8, tile) f32 slab
        return tgt_ref[k].astype(jnp.float32)

    t_conf = tch(4)
    obj_b = t_conf == 1.0
    obj = obj_b.astype(jnp.float32)
    noobj = (t_conf == 0.0).astype(jnp.float32)

    # ---------------- no-object confidence term (channels 4, 9) ----------------
    d4 = pch(4) - t_conf
    d9 = pch(9) - tch(9)
    noobj_term = d4 * d4 + d9 * d9

    # ---------------- class prediction term (channels 10..29) ----------------
    class_term = jnp.zeros_like(obj)
    for k in range(10, 30):
        dc = pch(k) - tch(k)
        class_term = class_term + dc * dc

    # ---------------- per-box IoU (diagonal pairing == torch.diag(iou)) -------
    # Corner math CSE'd per review: centers use a trace-time 1/S constant
    # (16 f32 divides per pair -> muls), half-extents are reused for both
    # corners, and areas come straight from w*h (ulp-level change only).
    def iou_for(off):
        tw, th = tch(off + 2), tch(off + 3)
        pw, ph = pch(off + 2), pch(off + 3)
        tcx, tcy = tch(off) * inv_S, tch(off + 1) * inv_S
        pcx, pcy = pch(off) * inv_S, pch(off + 1) * inv_S
        thw, thh = 0.5 * tw, 0.5 * th
        phw, phh = 0.5 * pw, 0.5 * ph
        lt_x = jnp.maximum(tcx - thw, pcx - phw)
        lt_y = jnp.maximum(tcy - thh, pcy - phh)
        rb_x = jnp.minimum(tcx + thw, pcx + phw)
        rb_y = jnp.minimum(tcy + thh, pcy + phh)
        w = jnp.maximum(rb_x - lt_x, 0.0)
        h = jnp.maximum(rb_y - lt_y, 0.0)
        inter = w * h
        denom = jnp.where(obj_b, tw * th + pw * ph - inter, 1.0)  # guard pads
        # Only 2 reciprocals/cell remain (the 16 /S divides are gone), so the
        # EUP is far from saturated; approx=True would also satisfy the 1e-3
        # tolerance, but the exact reciprocal keeps the `iou0 <= iou1`
        # tie-break bit-faithful to the PyTorch reference.
        return inter * pl.reciprocal(denom, approx=False)

    iou0 = iou_for(0)
    iou1 = iou_for(5)
    use_box1 = iou0 <= iou1            # matches `if iou[i] <= iou[i+1]: pick i+1`
    iou_resp = jnp.where(use_box1, iou1, iou0)

    def sel_p(k):  # element k of the responsible predicted box
        return jnp.where(use_box1, pch(5 + k), pch(k))

    def sel_t(k):  # element k of the matching target box
        return jnp.where(use_box1, tch(5 + k), tch(k))

    # ---------------- regression term (xy + sqrt-wh) ----------------
    dx = sel_p(0) - sel_t(0)
    dy = sel_p(1) - sel_t(1)
    dxy = dx * dx + dy * dy
    # guard sqrt inputs for non-object / padded cells (contribution is masked)
    pw_r = jnp.where(obj_b, sel_p(2), 1.0)
    ph_r = jnp.where(obj_b, sel_p(3), 1.0)
    tw_r = jnp.where(obj_b, sel_t(2), 1.0)
    th_r = jnp.where(obj_b, sel_t(3), 1.0)
    dw = jnp.sqrt(pw_r) - jnp.sqrt(tw_r)
    dh = jnp.sqrt(ph_r) - jnp.sqrt(th_r)
    dwh = dw * dw + dh * dh

    # ---------------- responsible-box confidence term ----------------
    dconf = sel_p(4) - iou_resp
    contain_term = dconf * dconf

    # fused, weighted per-cell loss accumulated straight into the lane-dense
    # output block; no scratch, no per-step cross-lane reduce, no epilogue.
    per_cell = (obj * (l_coord * (dxy + dwh) + contain_term + class_term)
                + (l_noobj * noobj) * noobj_term)
    out_ref[...] += per_cell[None]


def yolo_loss(pred_tensor, target_tensor, *, S, B, l_coord, l_noobj,
              tile_lanes=1024, num_partials=None):
    # B is fixed to 2 by the reference layout (conf at 4/9, boxes in 0:10).
    del B
    n = pred_tensor.shape[0]
    C = n * S * S

    if num_partials is None:
        num_partials = _default_num_partials()

    # lane extent of the packed cell axis, 128-aligned; never use more partials
    # than there are 128-lane blocks (keeps padding minimal for small batches).
    cc0 = _round_up(pl.cdiv(C, _SUBLANE), _LANE)
    num_partials = max(1, min(num_partials, cc0 // _LANE))
    cc = _round_up(cc0, num_partials * _LANE)

    # tile_lanes defaults to 1024: big enough to amortize the ~0.35us/step grid
    # overhead and give 8KB+ per-row DMA chunks, small enough (double-buffered
    # f32 inputs ~ 7.9 MiB total) to stay far below the 32 MiB VMEM budget and
    # keep vreg spill pressure tolerable on v5e.
    if cc <= num_partials * tile_lanes:
        tile_lanes = cc // num_partials
        steps = 1
    else:
        cc = _round_up(cc, num_partials * tile_lanes)
        steps = cc // (num_partials * tile_lanes)
    c_pad = cc * _SUBLANE

    def to_channels_major(x):
        # TODO(synk): move this relayout into the kernel (natural-layout
        # (cells, 30) blocks + in-kernel XLU transpose) once Mosaic reliably
        # lowers lane->sublane transposes of a 30-wide minor axis; under jit
        # the pad+reshape+transpose below fuses into a single XLA copy pass,
        # but it is still one extra HBM round-trip over the theoretical minimum.
        x = x.reshape(C, 30)                                  # free reshape
        if c_pad != C:
            x = jnp.pad(x, ((0, c_pad - C), (0, 0)))          # zero cells -> zero loss
        # (c_pad, 30) -> (cc, 8, 30) -> (30, 8, cc): channels-major, lane-dense
        return x.reshape(cc, _SUBLANE, 30).transpose(2, 1, 0)

    pred_cm = to_channels_major(pred_tensor)
    tgt_cm = to_channels_major(target_tensor)

    kernel = functools.partial(
        _yolo_loss_kernel,
        inv_S=1.0 / float(S), l_coord=float(l_coord), l_noobj=float(l_noobj))

    in_spec = pl.BlockSpec(
        (30, _SUBLANE, tile_lanes),
        lambda pt, i: (0, 0, pt * steps + i))

    out = pl.pallas_call(
        kernel,
        out_shape=jax.ShapeDtypeStruct(
            (num_partials, _SUBLANE, tile_lanes), jnp.float32),
        grid_spec=pltpu.PrefetchScalarGridSpec(
            num_scalar_prefetch=0,
            grid=(num_partials, steps),
            in_specs=[in_spec, in_spec],
            out_specs=pl.BlockSpec((1, _SUBLANE, tile_lanes),
                                   lambda pt, i: (pt, 0, 0))),
        compiler_params=pltpu.CompilerParams(
            dimension_semantics=("parallel", "arbitrary"),
            vmem_limit_bytes=32 * 1024 * 1024),
    )(pred_cm, tgt_cm)

    # padded cells contribute exactly zero; one tiny reduce + the 1/N scaling.
    return jnp.sum(out) / jnp.float32(n)


# ----------------------------- pure-JAX reference -----------------------------
def _yolo_loss_ref(pred, target, *, S, l_coord, l_noobj):
    n = pred.shape[0]
    C = n * int(S) * int(S)
    p = pred.reshape(C, 30).astype(jnp.float32)
    t = target.reshape(C, 30).astype(jnp.float32)
    obj = t[:, 4] == 1.0
    noobj = t[:, 4] == 0.0

    no_object_loss = jnp.sum(
        jnp.where(noobj, (p[:, 4] - t[:, 4]) ** 2 + (p[:, 9] - t[:, 9]) ** 2, 0.0))
    class_loss = jnp.sum(
        jnp.where(obj, jnp.sum((p[:, 10:] - t[:, 10:]) ** 2, axis=1), 0.0))

    def corners(b):
        x, y, w, h = b[:, 0], b[:, 1], b[:, 2], b[:, 3]
        return x / S - 0.5 * w, y / S - 0.5 * h, x / S + 0.5 * w, y / S + 0.5 * h

    def diag_iou(tb, pb):
        tx1, ty1, tx2, ty2 = corners(tb)
        px1, py1, px2, py2 = corners(pb)
        w = jnp.maximum(jnp.minimum(tx2, px2) - jnp.maximum(tx1, px1), 0.0)
        h = jnp.maximum(jnp.minimum(ty2, py2) - jnp.maximum(ty1, py1), 0.0)
        inter = w * h
        a1 = (tx2 - tx1) * (ty2 - ty1)
        a2 = (px2 - px1) * (py2 - py1)
        denom = jnp.where(obj, a1 + a2 - inter, 1.0)
        return inter / denom

    iou0 = diag_iou(t[:, 0:4], p[:, 0:4])
    iou1 = diag_iou(t[:, 5:9], p[:, 5:9])
    use1 = iou0 <= iou1
    iou_r = jnp.where(use1, iou1, iou0)
    sel = lambda a, k: jnp.where(use1, a[:, 5 + k], a[:, k])

    dxy = (sel(p, 0) - sel(t, 0)) ** 2 + (sel(p, 1) - sel(t, 1)) ** 2
    sw = lambda v: jnp.sqrt(jnp.where(obj, v, 1.0))
    dwh = (sw(sel(p, 2)) - sw(sel(t, 2))) ** 2 + (sw(sel(p, 3)) - sw(sel(t, 3))) ** 2
    regression = jnp.sum(jnp.where(obj, dxy + dwh, 0.0))
    contain = jnp.sum(jnp.where(obj, (sel(p, 4) - iou_r) ** 2, 0.0))
    return (l_coord * regression + contain + l_noobj * no_object_loss + class_loss) / n


if __name__ == "__main__":
    key = jax.random.PRNGKey(0)
    k_pred, k_obj, k_tgt = jax.random.split(key, 3)

    N_batch, S, B = 2, 7, 2
    l_coord, l_noobj = 5.0, 0.5

    # predictions: strictly positive w/h (sqrt is taken), conf & classes in (0,1)
    pred = jax.random.uniform(
        k_pred, (N_batch, S, S, 30), dtype=jnp.float32, minval=0.05, maxval=0.95)

    # targets: ~30% of cells contain an object; conf channels are exactly 0/1
    obj_ind = (jax.random.uniform(k_obj, (N_batch, S, S)) < 0.3).astype(jnp.float32)
    target = jax.random.uniform(
        k_tgt, (N_batch, S, S, 30), dtype=jnp.float32, minval=0.1, maxval=0.9)
    target = target.at[..., 4].set(obj_ind)
    target = target.at[..., 9].set(obj_ind)

    loss_fn = jax.jit(functools.partial(
        yolo_loss, S=S, B=B, l_coord=l_coord, l_noobj=l_noobj))
    loss = jax.block_until_ready(loss_fn(pred, target))

    ref = _yolo_loss_ref(pred, target, S=float(S), l_coord=l_coord, l_noobj=l_noobj)
    ref = jax.block_until_ready(ref)
    assert jnp.allclose(loss, ref, rtol=1e-3, atol=1e-3), (float(loss), float(ref))

    print("KERNEL_OK")
</pallas_src>

<mosaic_0001>
module attributes {stable_mosaic.version = 11 : i64} {
  func.func @_yolo_loss_kernel(%arg0: i32, %arg1: i32, %arg2: memref<30x8x128xf32, #tpu.memory_space<vmem>>, %arg3: memref<30x8x128xf32, #tpu.memory_space<vmem>>, %arg4: memref<1x8x128xf32, #tpu.memory_space<vmem>>) attributes {dimension_semantics = [#tpu.dimension_semantics<parallel>, #tpu.dimension_semantics<arbitrary>], iteration_bounds = array<i64: 1, 1>, scalar_prefetch = 0 : i64, scratch_operands = 0 : i64, tpu.core_type = #tpu.core_type<tc>, window_params = [{transform_indices = @transform_0, window_bounds = array<i64: 30, 8, 128>}, {transform_indices = @transform_1, window_bounds = array<i64: 30, 8, 128>}, {transform_indices = @transform_2, window_bounds = array<i64: 1, 8, 128>}]} {
    %c0_i32 = arith.constant 0 : i32
    %0 = arith.cmpi eq, %arg1, %c0_i32 : i32
    %1 = arith.extui %0 : i1 to i32
    %c0_i32_0 = arith.constant 0 : i32
    %2 = arith.cmpi ne, %1, %c0_i32_0 : i32
    scf.if %2 {
      %cst_241 = arith.constant 0.000000e+00 : f32
      %368 = vector.broadcast %cst_241 : f32 to vector<1x8x128xf32>
      %c0_242 = arith.constant 0 : index
      %c0_243 = arith.constant 0 : index
      %c0_244 = arith.constant 0 : index
      %369 = vector.load %arg4[%c0_242, %c0_243, %c0_244] : memref<1x8x128xf32, #tpu.memory_space<vmem>>, vector<1x8x128xf32>
      tpu.vector_store %arg4[%c0_242, %c0_243, %c0_244], %368 {strides = array<i32>} : memref<1x8x128xf32, #tpu.memory_space<vmem>>, vector<1x8x128xf32>,
    } else {
    }
    %c4 = arith.constant 4 : index
    %c0 = arith.constant 0 : index
    %c0_1 = arith.constant 0 : index
    %3 = vector.load %arg3[%c4, %c0, %c0_1] : memref<30x8x128xf32, #tpu.memory_space<vmem>>, vector<1x8x128xf32>
    %4 = vector.shape_cast %3 : vector<1x8x128xf32> to vector<8x128xf32>
    %cst = arith.constant 1.000000e+00 : f32
    %5 = vector.broadcast %cst : f32 to vector<8x128xf32>
    %6 = arith.cmpf oeq, %4, %5 : vector<8x128xf32>
    %7 = arith.extui %6 : vector<8x128xi1> to vector<8x128xi32>
    %8 = arith.sitofp %7 : vector<8x128xi32> to vector<8x128xf32>
    %cst_2 = arith.constant 0.000000e+00 : f32
    %9 = vector.broadcast %cst_2 : f32 to vector<8x128xf32>
    %10 = arith.cmpf oeq, %4, %9 : vector<8x128xf32>
    %11 = arith.extui %10 : vector<8x128xi1> to vector<8x128xi32>
    %12 = arith.sitofp %11 : vector<8x128xi32> to vector<8x128xf32>
    %c4_3 = arith.constant 4 : index
    %c0_4 = arith.constant 0 : index
    %c0_5 = arith.constant 0 : index
    %13 = vector.load %arg2[%c4_3, %c0_4, %c0_5] : memref<30x8x128xf32, #tpu.memory_space<vmem>>, vector<1x8x128xf32>
    %14 = vector.shape_cast %13 : vector<1x8x128xf32> to vector<8x128xf32>
    %15 = arith.subf %14, %4 : vector<8x128xf32>
    %c9 = arith.constant 9 : index
    %c0_6 = arith.constant 0 : index
    %c0_7 = arith.constant 0 : index
    %16 = vector.load %arg2[%c9, %c0_6, %c0_7] : memref<30x8x128xf32, #tpu.memory_space<vmem>>, vector<1x8x128xf32>
    %17 = vector.shape_cast %16 : vector<1x8x128xf32> to vector<8x128xf32>
    %c9_8 = arith.constant 9 : index
    %c0_9 = arith.constant 0 : index
    %c0_10 = arith.constant 0 : index
    %18 = vector.load %arg3[%c9_8, %c0_9, %c0_10] : memref<30x8x128xf32, #tpu.memory_space<vmem>>, vector<1x8x128xf32>
    %19 = vector.shape_cast %18 : vector<1x8x128xf32> to vector<8x128xf32>
    %20 = arith.subf %17, %19 : vector<8x128xf32>
    %21 = arith.mulf %15, %15 : vector<8x128xf32>
    %22 = arith.mulf %20, %20 : vector<8x128xf32>
    %23 = arith.addf %21, %22 : vector<8x128xf32>
    %cst_11 = arith.constant 0.000000e+00 : f32
    %24 = vector.broadcast %cst_11 : f32 to vector<8x128xf32>
    %c10 = arith.constant 10 : index
    %c0_12 = arith.constant 0 : index
    %c0_13 = arith.constant 0 : index
    %25 = vector.load %arg2[%c10, %c0_12, %c0_13] : memref<30x8x128xf32, #tpu.memory_space<vmem>>, vector<1x8x128xf32>
    %26 = vector.shape_cast %25 : vector<1x8x128xf32> to vector<8x128xf32>
    %c10_14 = arith.constant 10 : index
    %c0_15 = arith.constant 0 : index
    %c0_16 = arith.constant 0 : index
    %27 = vector.load %arg3[%c10_14, %c0_15, %c0_16] : memref<30x8x128xf32, #tpu.memory_space<vmem>>, vector<1x8x128xf32>
    %28 = vector.shape_cast %27 : vector<1x8x128xf32> to vector<8x128xf32>
    %29 = arith.subf %26, %28 : vector<8x128xf32>
    %30 = arith.mulf %29, %29 : vector<8x128xf32>
    %31 = arith.addf %24, %30 : vector<8x128xf32>
    %c11 = arith.constant 11 : index
    %c0_17 = arith.constant 0 : index
    %c0_18 = arith.constant 0 : index
    %32 = vector.load %arg2[%c11, %c0_17, %c0_18] : memref<30x8x128xf32, #tpu.memory_space<vmem>>, vector<1x8x128xf32>
    %33 = vector.shape_cast %32 : vector<1x8x128xf32> to vector<8x128xf32>
    %c11_19 = arith.constant 11 : index
    %c0_20 = arith.constant 0 : index
    %c0_21 = arith.constant 0 : index
    %34 = vector.load %arg3[%c11_19, %c0_20, %c0_21] : memref<30x8x128xf32, #tpu.memory_space<vmem>>, vector<1x8x128xf32>
    %35 = vector.shape_cast %34 : vector<1x8x128xf32> to vector<8x128xf32>
    %36 = arith.subf %33, %35 : vector<8x128xf32>
    %37 = arith.mulf %36, %36 : vector<8x128xf32>
    %38 = arith.addf %31, %37 : vector<8x128xf32>
    %c12 = arith.constant 12 : index
    %c0_22 = arith.constant 0 : index
    %c0_23 = arith.constant 0 : index
    %39 = vector.load %arg2[%c12, %c0_22, %c0_23] : memref<30x8x128xf32, #tpu.memory_space<vmem>>, vector<1x8x128xf32>
    %40 = vector.shape_cast %39 : vector<1x8x128xf32> to vector<8x128xf32>
    %c12_24 = arith.constant 12 : index
    %c0_25 = arith.constant 0 : index
    %c0_26 = arith.constant 0 : index
    %41 = vector.load %arg3[%c12_24, %c0_25, %c0_26] : memref<30x8x128xf32, #tpu.memory_space<vmem>>, vector<1x8x128xf32>
    %42 = vector.shape_cast %41 : vector<1x8x128xf32> to vector<8x128xf32>
    %43 = arith.subf %40, %42 : vector<8x128xf32>
    %44 = arith.mulf %43, %43 : vector<8x128xf32>
    %45 = arith.addf %38, %44 : vector<8x128xf32>
    %c13 = arith.constant 13 : index
    %c0_27 = arith.constant 0 : index
    %c0_28 = arith.constant 0 : index
    %46 = vector.load %arg2[%c13, %c0_27, %c0_28] : memref<30x8x128xf32, #tpu.memory_space<vmem>>, vector<1x8x128xf32>
    %47 = vector.shape_cast %46 : vector<1x8x128xf32> to vector<8x128xf32>
    %c13_29 = arith.constant 13 : index
    %c0_30 = arith.constant 0 : index
    %c0_31 = arith.constant 0 : index
    %48 = vector.load %arg3[%c13_29, %c0_30, %c0_31] : memref<30x8x128xf32, #tpu.memory_space<vmem>>, vector<1x8x128xf32>
    %49 = vector.shape_cast %48 : vector<1x8x128xf32> to vector<8x128xf32>
    %50 = arith.subf %47, %49 : vector<8x128xf32>
    %51 = arith.mulf %50, %50 : vector<8x128xf32>
    %52 = arith.addf %45, %51 : vector<8x128xf32>
    %c14 = arith.constant 14 : index
    %c0_32 = arith.constant 0 : index
    %c0_33 = arith.constant 0 : index
    %53 = vector.load %arg2[%c14, %c0_32, %c0_33] : memref<30x8x128xf32, #tpu.memory_space<vmem>>, vector<1x8x128xf32>
    %54 = vector.shape_cast %53 : vector<1x8x128xf32> to vector<8x128xf32>
    %c14_34 = arith.constant 14 : index
    %c0_35 = arith.constant 0 : index
    %c0_36 = arith.constant 0 : index
    %55 = vector.load %arg3[%c14_34, %c0_35, %c0_36] : memref<30x8x128xf32, #tpu.memory_space<vmem>>, vector<1x8x128xf32>
    %56 = vector.shape_cast %55 : vector<1x8x128xf32> to vector<8x128xf32>
    %57 = arith.subf %54, %56 : vector<8x128xf32>
    %58 = arith.mulf %57, %57 : vector<8x128xf32>
    %59 = arith.addf %52, %58 : vector<8x128xf32>
    %c15 = arith.constant 15 : index
    %c0_37 = arith.constant 0 : index
    %c0_38 = arith.constant 0 : index
    %60 = vector.load %arg2[%c15, %c0_37, %c0_38] : memref<30x8x128xf32, #tpu.memory_space<vmem>>, vector<1x8x128xf32>
    %61 = vector.shape_cast %60 : vector<1x8x128xf32> to vector<8x128xf32>
    %c15_39 = arith.constant 15 : index
    %c0_40 = arith.constant 0 : index
    %c0_41 = arith.constant 0 : index
    %62 = vector.load %arg3[%c15_39, %c0_40, %c0_41] : memref<30x8x128xf32, #tpu.memory_space<vmem>>, vector<1x8x128xf32>
    %63 = vector.shape_cast %62 : vector<1x8x128xf32> to vector<8x128xf32>
    %64 = arith.subf %61, %63 : vector<8x128xf32>
    %65 = arith.mulf %64, %64 : vector<8x128xf32>
    %66 = arith.addf %59, %65 : vector<8x128xf32>
    %c16 = arith.constant 16 : index
    %c0_42 = arith.constant 0 : index
    %c0_43 = arith.constant 0 : index
    %67 = vector.load %arg2[%c16, %c0_42, %c0_43] : memref<30x8x128xf32, #tpu.memory_space<vmem>>, vector<1x8x128xf32>
    %68 = vector.shape_cast %67 : vector<1x8x128xf32> to vector<8x128xf32>
    %c16_44 = arith.constant 16 : index
    %c0_45 = arith.constant 0 : index
    %c0_46 = arith.constant 0 : index
    %69 = vector.load %arg3[%c16_44, %c0_45, %c0_46] : memref<30x8x128xf32, #tpu.memory_space<vmem>>, vector<1x8x128xf32>
    %70 = vector.shape_cast %69 : vector<1x8x128xf32> to vector<8x128xf32>
    %71 = arith.subf %68, %70 : vector<8x128xf32>
    %72 = arith.mulf %71, %71 : vector<8x128xf32>
    %73 = arith.addf %66, %72 : vector<8x128xf32>
    %c17 = arith.constant 17 : index
    %c0_47 = arith.constant 0 : index
    %c0_48 = arith.constant 0 : index
    %74 = vector.load %arg2[%c17, %c0_47, %c0_48] : memref<30x8x128xf32, #tpu.memory_space<vmem>>, vector<1x8x128xf32>
    %75 = vector.shape_cast %74 : vector<1x8x128xf32> to vector<8x128xf32>
    %c17_49 = arith.constant 17 : index
    %c0_50 = arith.constant 0 : index
    %c0_51 = arith.constant 0 : index
    %76 = vector.load %arg3[%c17_49, %c0_50, %c0_51] : memref<30x8x128xf32, #tpu.memory_space<vmem>>, vector<1x8x128xf32>
    %77 = vector.shape_cast %76 : vector<1x8x128xf32> to vector<8x128xf32>
    %78 = arith.subf %75, %77 : vector<8x128xf32>
    %79 = arith.mulf %78, %78 : vector<8x128xf32>
    %80 = arith.addf %73, %79 : vector<8x128xf32>
    %c18 = arith.constant 18 : index
    %c0_52 = arith.constant 0 : index
    %c0_53 = arith.constant 0 : index
    %81 = vector.load %arg2[%c18, %c0_52, %c0_53] : memref<30x8x128xf32, #tpu.memory_space<vmem>>, vector<1x8x128xf32>
    %82 = vector.shape_cast %81 : vector<1x8x128xf32> to vector<8x128xf32>
    %c18_54 = arith.constant 18 : index
    %c0_55 = arith.constant 0 : index
    %c0_56 = arith.constant 0 : index
    %83 = vector.load %arg3[%c18_54, %c0_55, %c0_56] : memref<30x8x128xf32, #tpu.memory_space<vmem>>, vector<1x8x128xf32>
    %84 = vector.shape_cast %83 : vector<1x8x128xf32> to vector<8x128xf32>
    %85 = arith.subf %82, %84 : vector<8x128xf32>
    %86 = arith.mulf %85, %85 : vector<8x128xf32>
    %87 = arith.addf %80, %86 : vector<8x128xf32>
    %c19 = arith.constant 19 : index
    %c0_57 = arith.constant 0 : index
    %c0_58 = arith.constant 0 : index
    %88 = vector.load %arg2[%c19, %c0_57, %c0_58] : memref<30x8x128xf32, #tpu.memory_space<vmem>>, vector<1x8x128xf32>
    %89 = vector.shape_cast %88 : vector<1x8x128xf32> to vector<8x128xf32>
    %c19_59 = arith.constant 19 : index
    %c0_60 = arith.constant 0 : index
    %c0_61 = arith.constant 0 : index
    %90 = vector.load %arg3[%c19_59, %c0_60, %c0_61] : memref<30x8x128xf32, #tpu.memory_space<vmem>>, vector<1x8x128xf32>
    %91 = vector.shape_cast %90 : vector<1x8x128xf32> to vector<8x128xf32>
    %92 = arith.subf %89, %91 : vector<8x128xf32>
    %93 = arith.mulf %92, %92 : vector<8x128xf32>
    %94 = arith.addf %87, %93 : vector<8x128xf32>
    %c20 = arith.constant 20 : index
    %c0_62 = arith.constant 0 : index
    %c0_63 = arith.constant 0 : index
    %95 = vector.load %arg2[%c20, %c0_62, %c0_63] : memref<30x8x128xf32, #tpu.memory_space<vmem>>, vector<1x8x128xf32>
    %96 = vector.shape_cast %95 : vector<1x8x128xf32> to vector<8x128xf32>
    %c20_64 = arith.constant 20 : index
    %c0_65 = arith.constant 0 : index
    %c0_66 = arith.constant 0 : index
    %97 = vector.load %arg3[%c20_64, %c0_65, %c0_66] : memref<30x8x128xf32, #tpu.memory_space<vmem>>, vector<1x8x128xf32>
    %98 = vector.shape_cast %97 : vector<1x8x128xf32> to vector<8x128xf32>
    %99 = arith.subf %96, %98 : vector<8x128xf32>
    %100 = arith.mulf %99, %99 : vector<8x128xf32>
    %101 = arith.addf %94, %100 : vector<8x128xf32>
    %c21 = arith.constant 21 : index
    %c0_67 = arith.constant 0 : index
    %c0_68 = arith.constant 0 : index
    %102 = vector.load %arg2[%c21, %c0_67, %c0_68] : memref<30x8x128xf32, #tpu.memory_space<vmem>>, vector<1x8x128xf32>
    %103 = vector.shape_cast %102 : vector<1x8x128xf32> to vector<8x128xf32>
    %c21_69 = arith.constant 21 : index
    %c0_70 = arith.constant 0 : index
    %c0_71 = arith.constant 0 : index
    %104 = vector.load %arg3[%c21_69, %c0_70, %c0_71] : memref<30x8x128xf32, #tpu.memory_space<vmem>>, vector<1x8x128xf32>
    %105 = vector.shape_cast %104 : vector<1x8x128xf32> to vector<8x128xf32>
    %106 = arith.subf %103, %105 : vector<8x128xf32>
    %107 = arith.mulf %106, %106 : vector<8x128xf32>
    %108 = arith.addf %101, %107 : vector<8x128xf32>
    %c22 = arith.constant 22 : index
    %c0_72 = arith.constant 0 : index
    %c0_73 = arith.constant 0 : index
    %109 = vector.load %arg2[%c22, %c0_72, %c0_73] : memref<30x8x128xf32, #tpu.memory_space<vmem>>, vector<1x8x128xf32>
    %110 = vector.shape_cast %109 : vector<1x8x128xf32> to vector<8x128xf32>
    %c22_74 = arith.constant 22 : index
    %c0_75 = arith.constant 0 : index
    %c0_76 = arith.constant 0 : index
    %111 = vector.load %arg3[%c22_74, %c0_75, %c0_76] : memref<30x8x128xf32, #tpu.memory_space<vmem>>, vector<1x8x128xf32>
    %112 = vector.shape_cast %111 : vector<1x8x128xf32> to vector<8x128xf32>
    %113 = arith.subf %110, %112 : vector<8x128xf32>
    %114 = arith.mulf %113, %113 : vector<8x128xf32>
    %115 = arith.addf %108, %114 : vector<8x128xf32>
    %c23 = arith.constant 23 : index
    %c0_77 = arith.constant 0 : index
    %c0_78 = arith.constant 0 : index
    %116 = vector.load %arg2[%c23, %c0_77, %c0_78] : memref<30x8x128xf32, #tpu.memory_space<vmem>>, vector<1x8x128xf32>
    %117 = vector.shape_cast %116 : vector<1x8x128xf32> to vector<8x128xf32>
    %c23_79 = arith.constant 23 : index
    %c0_80 = arith.constant 0 : index
    %c0_81 = arith.constant 0 : index
    %118 = vector.load %arg3[%c23_79, %c0_80, %c0_81] : memref<30x8x128xf32, #tpu.memory_space<vmem>>, vector<1x8x128xf32>
    %119 = vector.shape_cast %118 : vector<1x8x128xf32> to vector<8x128xf32>
    %120 = arith.subf %117, %119 : vector<8x128xf32>
    %121 = arith.mulf %120, %120 : vector<8x128xf32>
    %122 = arith.addf %115, %121 : vector<8x128xf32>
    %c24 = arith.constant 24 : index
    %c0_82 = arith.constant 0 : index
    %c0_83 = arith.constant 0 : index
    %123 = vector.load %arg2[%c24, %c0_82, %c0_83] : memref<30x8x128xf32, #tpu.memory_space<vmem>>, vector<1x8x128xf32>
    %124 = vector.shape_cast %123 : vector<1x8x128xf32> to vector<8x128xf32>
    %c24_84 = arith.constant 24 : index
    %c0_85 = arith.constant 0 : index
    %c0_86 = arith.constant 0 : index
    %125 = vector.load %arg3[%c24_84, %c0_85, %c0_86] : memref<30x8x128xf32, #tpu.memory_space<vmem>>, vector<1x8x128xf32>
    %126 = vector.shape_cast %125 : vector<1x8x128xf32> to vector<8x128xf32>
    %127 = arith.subf %124, %126 : vector<8x128xf32>
    %128 = arith.mulf %127, %127 : vector<8x128xf32>
    %129 = arith.addf %122, %128 : vector<8x128xf32>
    %c25 = arith.constant 25 : index
    %c0_87 = arith.constant 0 : index
    %c0_88 = arith.constant 0 : index
    %130 = vector.load %arg2[%c25, %c0_87, %c0_88] : memref<30x8x128xf32, #tpu.memory_space<vmem>>, vector<1x8x128xf32>
    %131 = vector.shape_cast %130 : vector<1x8x128xf32> to vector<8x128xf32>
    %c25_89 = arith.constant 25 : index
    %c0_90 = arith.constant 0 : index
    %c0_91 = arith.constant 0 : index
    %132 = vector.load %arg3[%c25_89, %c0_90, %c0_91] : memref<30x8x128xf32, #tpu.memory_space<vmem>>, vector<1x8x128xf32>
    %133 = vector.shape_cast %132 : vector<1x8x128xf32> to vector<8x128xf32>
    %134 = arith.subf %131, %133 : vector<8x128xf32>
    %135 = arith.mulf %134, %134 : vector<8x128xf32>
    %136 = arith.addf %129, %135 : vector<8x128xf32>
    %c26 = arith.constant 26 : index
    %c0_92 = arith.constant 0 : index
    %c0_93 = arith.constant 0 : index
    %137 = vector.load %arg2[%c26, %c0_92, %c0_93] : memref<30x8x128xf32, #tpu.memory_space<vmem>>, vector<1x8x128xf32>
    %138 = vector.shape_cast %137 : vector<1x8x128xf32> to vector<8x128xf32>
    %c26_94 = arith.constant 26 : index
    %c0_95 = arith.constant 0 : index
    %c0_96 = arith.constant 0 : index
    %139 = vector.load %arg3[%c26_94, %c0_95, %c0_96] : memref<30x8x128xf32, #tpu.memory_space<vmem>>, vector<1x8x128xf32>
    %140 = vector.shape_cast %139 : vector<1x8x128xf32> to vector<8x128xf32>
    %141 = arith.subf %138, %140 : vector<8x128xf32>
    %142 = arith.mulf %141, %141 : vector<8x128xf32>
    %143 = arith.addf %136, %142 : vector<8x128xf32>
    %c27 = arith.constant 27 : index
    %c0_97 = arith.constant 0 : index
    %c0_98 = arith.constant 0 : index
    %144 = vector.load %arg2[%c27, %c0_97, %c0_98] : memref<30x8x128xf32, #tpu.memory_space<vmem>>, vector<1x8x128xf32>
    %145 = vector.shape_cast %144 : vector<1x8x128xf32> to vector<8x128xf32>
    %c27_99 = arith.constant 27 : index
    %c0_100 = arith.constant 0 : index
    %c0_101 = arith.constant 0 : index
    %146 = vector.load %arg3[%c27_99, %c0_100, %c0_101] : memref<30x8x128xf32, #tpu.memory_space<vmem>>, vector<1x8x128xf32>
    %147 = vector.shape_cast %146 : vector<1x8x128xf32> to vector<8x128xf32>
    %148 = arith.subf %145, %147 : vector<8x128xf32>
    %149 = arith.mulf %148, %148 : vector<8x128xf32>
    %150 = arith.addf %143, %149 : vector<8x128xf32>
    %c28 = arith.constant 28 : index
    %c0_102 = arith.constant 0 : index
    %c0_103 = arith.constant 0 : index
    %151 = vector.load %arg2[%c28, %c0_102, %c0_103] : memref<30x8x128xf32, #tpu.memory_space<vmem>>, vector<1x8x128xf32>
    %152 = vector.shape_cast %151 : vector<1x8x128xf32> to vector<8x128xf32>
    %c28_104 = arith.constant 28 : index
    %c0_105 = arith.constant 0 : index
    %c0_106 = arith.constant 0 : index
    %153 = vector.load %arg3[%c28_104, %c0_105, %c0_106] : memref<30x8x128xf32, #tpu.memory_space<vmem>>, vector<1x8x128xf32>
    %154 = vector.shape_cast %153 : vector<1x8x128xf32> to vector<8x128xf32>
    %155 = arith.subf %152, %154 : vector<8x128xf32>
    %156 = arith.mulf %155, %155 : vector<8x128xf32>
    %157 = arith.addf %150, %156 : vector<8x128xf32>
    %c29 = arith.constant 29 : index
    %c0_107 = arith.constant 0 : index
    %c0_108 = arith.constant 0 : index
    %158 = vector.load %arg2[%c29, %c0_107, %c0_108] : memref<30x8x128xf32, #tpu.memory_space<vmem>>, vector<1x8x128xf32>
    %159 = vector.shape_cast %158 : vector<1x8x128xf32> to vector<8x128xf32>
    %c29_109 = arith.constant 29 : index
    %c0_110 = arith.constant 0 : index
    %c0_111 = arith.constant 0 : index
    %160 = vector.load %arg3[%c29_109, %c0_110, %c0_111] : memref<30x8x128xf32, #tpu.memory_space<vmem>>, vector<1x8x128xf32>
    %161 = vector.shape_cast %160 : vector<1x8x128xf32> to vector<8x128xf32>
    %162 = arith.subf %159, %161 : vector<8x128xf32>
    %163 = arith.mulf %162, %162 : vector<8x128xf32>
    %164 = arith.addf %157, %163 : vector<8x128xf32>
    %c2 = arith.constant 2 : index
    %c0_112 = arith.constant 0 : index
    %c0_113 = arith.constant 0 : index
    %165 = vector.load %arg3[%c2, %c0_112, %c0_113] : memref<30x8x128xf32, #tpu.memory_space<vmem>>, vector<1x8x128xf32>
    %166 = vector.shape_cast %165 : vector<1x8x128xf32> to vector<8x128xf32>
    %c3 = arith.constant 3 : index
    %c0_114 = arith.constant 0 : index
    %c0_115 = arith.constant 0 : index
    %167 = vector.load %arg3[%c3, %c0_114, %c0_115] : memref<30x8x128xf32, #tpu.memory_space<vmem>>, vector<1x8x128xf32>
    %168 = vector.shape_cast %167 : vector<1x8x128xf32> to vector<8x128xf32>
    %c2_116 = arith.constant 2 : index
    %c0_117 = arith.constant 0 : index
    %c0_118 = arith.constant 0 : index
    %169 = vector.load %arg2[%c2_116, %c0_117, %c0_118] : memref<30x8x128xf32, #tpu.memory_space<vmem>>, vector<1x8x128xf32>
    %170 = vector.shape_cast %169 : vector<1x8x128xf32> to vector<8x128xf32>
    %c3_119 = arith.constant 3 : index
    %c0_120 = arith.constant 0 : index
    %c0_121 = arith.constant 0 : index
    %171 = vector.load %arg2[%c3_119, %c0_120, %c0_121] : memref<30x8x128xf32, #tpu.memory_space<vmem>>, vector<1x8x128xf32>
    %172 = vector.shape_cast %171 : vector<1x8x128xf32> to vector<8x128xf32>
    %c0_122 = arith.constant 0 : index
    %c0_123 = arith.constant 0 : index
    %c0_124 = arith.constant 0 : index
    %173 = vector.load %arg3[%c0_122, %c0_123, %c0_124] : memref<30x8x128xf32, #tpu.memory_space<vmem>>, vector<1x8x128xf32>
    %174 = vector.shape_cast %173 : vector<1x8x128xf32> to vector<8x128xf32>
    %cst_125 = arith.constant 0.142857149 : f32
    %175 = vector.broadcast %cst_125 : f32 to vector<8x128xf32>
    %176 = arith.mulf %174, %175 : vector<8x128xf32>
    %c1 = arith.constant 1 : index
    %c0_126 = arith.constant 0 : index
    %c0_127 = arith.constant 0 : index
    %177 = vector.load %arg3[%c1, %c0_126, %c0_127] : memref<30x8x128xf32, #tpu.memory_space<vmem>>, vector<1x8x128xf32>
    %178 = vector.shape_cast %177 : vector<1x8x128xf32> to vector<8x128xf32>
    %cst_128 = arith.constant 0.142857149 : f32
    %179 = vector.broadcast %cst_128 : f32 to vector<8x128xf32>
    %180 = arith.mulf %178, %179 : vector<8x128xf32>
    %c0_129 = arith.constant 0 : index
    %c0_130 = arith.constant 0 : index
    %c0_131 = arith.constant 0 : index
    %181 = vector.load %arg2[%c0_129, %c0_130, %c0_131] : memref<30x8x128xf32, #tpu.memory_space<vmem>>, vector<1x8x128xf32>
    %182 = vector.shape_cast %181 : vector<1x8x128xf32> to vector<8x128xf32>
    %cst_132 = arith.constant 0.142857149 : f32
    %183 = vector.broadcast %cst_132 : f32 to vector<8x128xf32>
    %184 = arith.mulf %182, %183 : vector<8x128xf32>
    %c1_133 = arith.constant 1 : index
    %c0_134 = arith.constant 0 : index
    %c0_135 = arith.constant 0 : index
    %185 = vector.load %arg2[%c1_133, %c0_134, %c0_135] : memref<30x8x128xf32, #tpu.memory_space<vmem>>, vector<1x8x128xf32>
    %186 = vector.shape_cast %185 : vector<1x8x128xf32> to vector<8x128xf32>
    %cst_136 = arith.constant 0.142857149 : f32
    %187 = vector.broadcast %cst_136 : f32 to vector<8x128xf32>
    %188 = arith.mulf %186, %187 : vector<8x128xf32>
    %cst_137 = arith.constant 5.000000e-01 : f32
    %189 = vector.broadcast %cst_137 : f32 to vector<8x128xf32>
    %190 = arith.mulf %189, %166 : vector<8x128xf32>
    %cst_138 = arith.constant 5.000000e-01 : f32
    %191 = vector.broadcast %cst_138 : f32 to vector<8x128xf32>
    %192 = arith.mulf %191, %168 : vector<8x128xf32>
    %cst_139 = arith.constant 5.000000e-01 : f32
    %193 = vector.broadcast %cst_139 : f32 to vector<8x128xf32>
    %194 = arith.mulf %193, %170 : vector<8x128xf32>
    %cst_140 = arith.constant 5.000000e-01 : f32
    %195 = vector.broadcast %cst_140 : f32 to vector<8x128xf32>
    %196 = arith.mulf %195, %172 : vector<8x128xf32>
    %197 = arith.subf %176, %190 : vector<8x128xf32>
    %198 = arith.subf %184, %194 : vector<8x128xf32>
    %199 = arith.maximumf %197, %198 : vector<8x128xf32>
    %200 = arith.subf %180, %192 : vector<8x128xf32>
    %201 = arith.subf %188, %196 : vector<8x128xf32>
    %202 = arith.maximumf %200, %201 : vector<8x128xf32>
    %203 = arith.addf %176, %190 : vector<8x128xf32>
    %204 = arith.addf %184, %194 : vector<8x128xf32>
    %205 = arith.minimumf %203, %204 : vector<8x128xf32>
    %206 = arith.addf %180, %192 : vector<8x128xf32>
    %207 = arith.addf %188, %196 : vector<8x128xf32>
    %208 = arith.minimumf %206, %207 : vector<8x128xf32>
    %209 = arith.subf %205, %199 : vector<8x128xf32>
    %cst_141 = arith.constant 0.000000e+00 : f32
    %210 = vector.broadcast %cst_141 : f32 to vector<8x128xf32>
    %211 = arith.maximumf %209, %210 : vector<8x128xf32>
    %212 = arith.subf %208, %202 : vector<8x128xf32>
    %cst_142 = arith.constant 0.000000e+00 : f32
    %213 = vector.broadcast %cst_142 : f32 to vector<8x128xf32>
    %214 = arith.maximumf %212, %213 : vector<8x128xf32>
    %215 = arith.mulf %211, %214 : vector<8x128xf32>
    %216 = arith.mulf %166, %168 : vector<8x128xf32>
    %217 = arith.mulf %170, %172 : vector<8x128xf32>
    %218 = arith.addf %216, %217 : vector<8x128xf32>
    %219 = arith.subf %218, %215 : vector<8x128xf32>
    %cst_143 = arith.constant 1.000000e+00 : f32
    %220 = vector.broadcast %cst_143 : f32 to vector<8x128xf32>
    %221 = arith.select %6, %219, %220 : vector<8x128xi1>, vector<8x128xf32>
    %222 = tpu.reciprocal %221 : vector<8x128xf32> -> vector<8x128xf32>
    %223 = arith.mulf %215, %222 : vector<8x128xf32>
    %c7 = arith.constant 7 : index
    %c0_144 = arith.constant 0 : index
    %c0_145 = arith.constant 0 : index
    %224 = vector.load %arg3[%c7, %c0_144, %c0_145] : memref<30x8x128xf32, #tpu.memory_space<vmem>>, vector<1x8x128xf32>
    %225 = vector.shape_cast %224 : vector<1x8x128xf32> to vector<8x128xf32>
    %c8 = arith.constant 8 : index
    %c0_146 = arith.constant 0 : index
    %c0_147 = arith.constant 0 : index
    %226 = vector.load %arg3[%c8, %c0_146, %c0_147] : memref<30x8x128xf32, #tpu.memory_space<vmem>>, vector<1x8x128xf32>
    %227 = vector.shape_cast %226 : vector<1x8x128xf32> to vector<8x128xf32>
    %c7_148 = arith.constant 7 : index
    %c0_149 = arith.constant 0 : index
    %c0_150 = arith.constant 0 : index
    %228 = vector.load %arg2[%c7_148, %c0_149, %c0_150] : memref<30x8x128xf32, #tpu.memory_space<vmem>>, vector<1x8x128xf32>
    %229 = vector.shape_cast %228 : vector<1x8x128xf32> to vector<8x128xf32>
    %c8_151 = arith.constant 8 : index
    %c0_152 = arith.constant 0 : index
    %c0_153 = arith.constant 0 : index
    %230 = vector.load %arg2[%c8_151, %c0_152, %c0_153] : memref<30x8x128xf32, #tpu.memory_space<vmem>>, vector<1x8x128xf32>
    %231 = vector.shape_cast %230 : vector<1x8x128xf32> to vector<8x128xf32>
    %c5 = arith.constant 5 : index
    %c0_154 = arith.constant 0 : index
    %c0_155 = arith.constant 0 : index
    %232 = vector.load %arg3[%c5, %c0_154, %c0_155] : memref<30x8x128xf32, #tpu.memory_space<vmem>>, vector<1x8x128xf32>
    %233 = vector.shape_cast %232 : vector<1x8x128xf32> to vector<8x128xf32>
    %cst_156 = arith.constant 0.142857149 : f32
    %234 = vector.broadcast %cst_156 : f32 to vector<8x128xf32>
    %235 = arith.mulf %233, %234 : vector<8x128xf32>
    %c6 = arith.constant 6 : index
    %c0_157 = arith.constant 0 : index
    %c0_158 = arith.constant 0 : index
    %236 = vector.load %arg3[%c6, %c0_157, %c0_158] : memref<30x8x128xf32, #tpu.memory_space<vmem>>, vector<1x8x128xf32>
    %237 = vector.shape_cast %236 : vector<1x8x128xf32> to vector<8x128xf32>
    %cst_159 = arith.constant 0.142857149 : f32
    %238 = vector.broadcast %cst_159 : f32 to vector<8x128xf32>
    %239 = arith.mulf %237, %238 : vector<8x128xf32>
    %c5_160 = arith.constant 5 : index
    %c0_161 = arith.constant 0 : index
    %c0_162 = arith.constant 0 : index
    %240 = vector.load %arg2[%c5_160, %c0_161, %c0_162] : memref<30x8x128xf32, #tpu.memory_space<vmem>>, vector<1x8x128xf32>
    %241 = vector.shape_cast %240 : vector<1x8x128xf32> to vector<8x128xf32>
    %cst_163 = arith.constant 0.142857149 : f32
    %242 = vector.broadcast %cst_163 : f32 to vector<8x128xf32>
    %243 = arith.mulf %241, %242 : vector<8x128xf32>
    %c6_164 = arith.constant 6 : index
    %c0_165 = arith.constant 0 : index
    %c0_166 = arith.constant 0 : index
    %244 = vector.load %arg2[%c6_164, %c0_165, %c0_166] : memref<30x8x128xf32, #tpu.memory_space<vmem>>, vector<1x8x128xf32>
    %245 = vector.shape_cast %244 : vector<1x8x128xf32> to vector<8x128xf32>
    %cst_167 = arith.constant 0.142857149 : f32
    %246 = vector.broadcast %cst_167 : f32 to vector<8x128xf32>
    %247 = arith.mulf %245, %246 : vector<8x128xf32>
    %cst_168 = arith.constant 5.000000e-01 : f32
    %248 = vector.broadcast %cst_168 : f32 to vector<8x128xf32>
    %249 = arith.mulf %248, %225 : vector<8x128xf32>
    %cst_169 = arith.constant 5.000000e-01 : f32
    %250 = vector.broadcast %cst_169 : f32 to vector<8x128xf32>
    %251 = arith.mulf %250, %227 : vector<8x128xf32>
    %cst_170 = arith.constant 5.000000e-01 : f32
    %252 = vector.broadcast %cst_170 : f32 to vector<8x128xf32>
    %253 = arith.mulf %252, %229 : vector<8x128xf32>
    %cst_171 = arith.constant 5.000000e-01 : f32
    %254 = vector.broadcast %cst_171 : f32 to vector<8x128xf32>
    %255 = arith.mulf %254, %231 : vector<8x128xf32>
    %256 = arith.subf %235, %249 : vector<8x128xf32>
    %257 = arith.subf %243, %253 : vector<8x128xf32>
    %258 = arith.maximumf %256, %257 : vector<8x128xf32>
    %259 = arith.subf %239, %251 : vector<8x128xf32>
    %260 = arith.subf %247, %255 : vector<8x128xf32>
    %261 = arith.maximumf %259, %260 : vector<8x128xf32>
    %262 = arith.addf %235, %249 : vector<8x128xf32>
    %263 = arith.addf %243, %253 : vector<8x128xf32>
    %264 = arith.minimumf %262, %263 : vector<8x128xf32>
    %265 = arith.addf %239, %251 : vector<8x128xf32>
    %266 = arith.addf %247, %255 : vector<8x128xf32>
    %267 = arith.minimumf %265, %266 : vector<8x128xf32>
    %268 = arith.subf %264, %258 : vector<8x128xf32>
    %cst_172 = arith.constant 0.000000e+00 : f32
    %269 = vector.broadcast %cst_172 : f32 to vector<8x128xf32>
    %270 = arith.maximumf %268, %269 : vector<8x128xf32>
    %271 = arith.subf %267, %261 : vector<8x128xf32>
    %cst_173 = arith.constant 0.000000e+00 : f32
    %272 = vector.broadcast %cst_173 : f32 to vector<8x128xf32>
    %273 = arith.maximumf %271, %272 : vector<8x128xf32>
    %274 = arith.mulf %270, %273 : vector<8x128xf32>
    %275 = arith.mulf %225, %227 : vector<8x128xf32>
    %276 = arith.mulf %229, %231 : vector<8x128xf32>
    %277 = arith.addf %275, %276 : vector<8x128xf32>
    %278 = arith.subf %277, %274 : vector<8x128xf32>
    %cst_174 = arith.constant 1.000000e+00 : f32
    %279 = vector.broadcast %cst_174 : f32 to vector<8x128xf32>
    %280 = arith.select %6, %278, %279 : vector<8x128xi1>, vector<8x128xf32>
    %281 = tpu.reciprocal %280 : vector<8x128xf32> -> vector<8x128xf32>
    %282 = arith.mulf %274, %281 : vector<8x128xf32>
    %283 = arith.cmpf ole, %223, %282 : vector<8x128xf32>
    %284 = arith.select %283, %282, %223 : vector<8x128xi1>, vector<8x128xf32>
    %c5_175 = arith.constant 5 : index
    %c0_176 = arith.constant 0 : index
    %c0_177 = arith.constant 0 : index
    %285 = vector.load %arg2[%c5_175, %c0_176, %c0_177] : memref<30x8x128xf32, #tpu.memory_space<vmem>>, vector<1x8x128xf32>
    %286 = vector.shape_cast %285 : vector<1x8x128xf32> to vector<8x128xf32>
    %c0_178 = arith.constant 0 : index
    %c0_179 = arith.constant 0 : index
    %c0_180 = arith.constant 0 : index
    %287 = vector.load %arg2[%c0_178, %c0_179, %c0_180] : memref<30x8x128xf32, #tpu.memory_space<vmem>>, vector<1x8x128xf32>
    %288 = vector.shape_cast %287 : vector<1x8x128xf32> to vector<8x128xf32>
    %289 = arith.select %283, %286, %288 : vector<8x128xi1>, vector<8x128xf32>
    %c5_181 = arith.constant 5 : index
    %c0_182 = arith.constant 0 : index
    %c0_183 = arith.constant 0 : index
    %290 = vector.load %arg3[%c5_181, %c0_182, %c0_183] : memref<30x8x128xf32, #tpu.memory_space<vmem>>, vector<1x8x128xf32>
    %291 = vector.shape_cast %290 : vector<1x8x128xf32> to vector<8x128xf32>
    %c0_184 = arith.constant 0 : index
    %c0_185 = arith.constant 0 : index
    %c0_186 = arith.constant 0 : index
    %292 = vector.load %arg3[%c0_184, %c0_185, %c0_186] : memref<30x8x128xf32, #tpu.memory_space<vmem>>, vector<1x8x128xf32>
    %293 = vector.shape_cast %292 : vector<1x8x128xf32> to vector<8x128xf32>
    %294 = arith.select %283, %291, %293 : vector<8x128xi1>, vector<8x128xf32>
    %295 = arith.subf %289, %294 : vector<8x128xf32>
    %c6_187 = arith.constant 6 : index
    %c0_188 = arith.constant 0 : index
    %c0_189 = arith.constant 0 : index
    %296 = vector.load %arg2[%c6_187, %c0_188, %c0_189] : memref<30x8x128xf32, #tpu.memory_space<vmem>>, vector<1x8x128xf32>
    %297 = vector.shape_cast %296 : vector<1x8x128xf32> to vector<8x128xf32>
    %c1_190 = arith.constant 1 : index
    %c0_191 = arith.constant 0 : index
    %c0_192 = arith.constant 0 : index
    %298 = vector.load %arg2[%c1_190, %c0_191, %c0_192] : memref<30x8x128xf32, #tpu.memory_space<vmem>>, vector<1x8x128xf32>
    %299 = vector.shape_cast %298 : vector<1x8x128xf32> to vector<8x128xf32>
    %300 = arith.select %283, %297, %299 : vector<8x128xi1>, vector<8x128xf32>
    %c6_193 = arith.constant 6 : index
    %c0_194 = arith.constant 0 : index
    %c0_195 = arith.constant 0 : index
    %301 = vector.load %arg3[%c6_193, %c0_194, %c0_195] : memref<30x8x128xf32, #tpu.memory_space<vmem>>, vector<1x8x128xf32>
    %302 = vector.shape_cast %301 : vector<1x8x128xf32> to vector<8x128xf32>
    %c1_196 = arith.constant 1 : index
    %c0_197 = arith.constant 0 : index
    %c0_198 = arith.constant 0 : index
    %303 = vector.load %arg3[%c1_196, %c0_197, %c0_198] : memref<30x8x128xf32, #tpu.memory_space<vmem>>, vector<1x8x128xf32>
    %304 = vector.shape_cast %303 : vector<1x8x128xf32> to vector<8x128xf32>
    %305 = arith.select %283, %302, %304 : vector<8x128xi1>, vector<8x128xf32>
    %306 = arith.subf %300, %305 : vector<8x128xf32>
    %307 = arith.mulf %295, %295 : vector<8x128xf32>
    %308 = arith.mulf %306, %306 : vector<8x128xf32>
    %309 = arith.addf %307, %308 : vector<8x128xf32>
    %c7_199 = arith.constant 7 : index
    %c0_200 = arith.constant 0 : index
    %c0_201 = arith.constant 0 : index
    %310 = vector.load %arg2[%c7_199, %c0_200, %c0_201] : memref<30x8x128xf32, #tpu.memory_space<vmem>>, vector<1x8x128xf32>
    %311 = vector.shape_cast %310 : vector<1x8x128xf32> to vector<8x128xf32>
    %c2_202 = arith.constant 2 : index
    %c0_203 = arith.constant 0 : index
    %c0_204 = arith.constant 0 : index
    %312 = vector.load %arg2[%c2_202, %c0_203, %c0_204] : memref<30x8x128xf32, #tpu.memory_space<vmem>>, vector<1x8x128xf32>
    %313 = vector.shape_cast %312 : vector<1x8x128xf32> to vector<8x128xf32>
    %314 = arith.select %283, %311, %313 : vector<8x128xi1>, vector<8x128xf32>
    %cst_205 = arith.constant 1.000000e+00 : f32
    %315 = vector.broadcast %cst_205 : f32 to vector<8x128xf32>
    %316 = arith.select %6, %314, %315 : vector<8x128xi1>, vector<8x128xf32>
    %c8_206 = arith.constant 8 : index
    %c0_207 = arith.constant 0 : index
    %c0_208 = arith.constant 0 : index
    %317 = vector.load %arg2[%c8_206, %c0_207, %c0_208] : memref<30x8x128xf32, #tpu.memory_space<vmem>>, vector<1x8x128xf32>
    %318 = vector.shape_cast %317 : vector<1x8x128xf32> to vector<8x128xf32>
    %c3_209 = arith.constant 3 : index
    %c0_210 = arith.constant 0 : index
    %c0_211 = arith.constant 0 : index
    %319 = vector.load %arg2[%c3_209, %c0_210, %c0_211] : memref<30x8x128xf32, #tpu.memory_space<vmem>>, vector<1x8x128xf32>
    %320 = vector.shape_cast %319 : vector<1x8x128xf32> to vector<8x128xf32>
    %321 = arith.select %283, %318, %320 : vector<8x128xi1>, vector<8x128xf32>
    %cst_212 = arith.constant 1.000000e+00 : f32
    %322 = vector.broadcast %cst_212 : f32 to vector<8x128xf32>
    %323 = arith.select %6, %321, %322 : vector<8x128xi1>, vector<8x128xf32>
    %c7_213 = arith.constant 7 : index
    %c0_214 = arith.constant 0 : index
    %c0_215 = arith.constant 0 : index
    %324 = vector.load %arg3[%c7_213, %c0_214, %c0_215] : memref<30x8x128xf32, #tpu.memory_space<vmem>>, vector<1x8x128xf32>
    %325 = vector.shape_cast %324 : vector<1x8x128xf32> to vector<8x128xf32>
    %c2_216 = arith.constant 2 : index
    %c0_217 = arith.constant 0 : index
    %c0_218 = arith.constant 0 : index
    %326 = vector.load %arg3[%c2_216, %c0_217, %c0_218] : memref<30x8x128xf32, #tpu.memory_space<vmem>>, vector<1x8x128xf32>
    %327 = vector.shape_cast %326 : vector<1x8x128xf32> to vector<8x128xf32>
    %328 = arith.select %283, %325, %327 : vector<8x128xi1>, vector<8x128xf32>
    %cst_219 = arith.constant 1.000000e+00 : f32
    %329 = vector.broadcast %cst_219 : f32 to vector<8x128xf32>
    %330 = arith.select %6, %328, %329 : vector<8x128xi1>, vector<8x128xf32>
    %c8_220 = arith.constant 8 : index
    %c0_221 = arith.constant 0 : index
    %c0_222 = arith.constant 0 : index
    %331 = vector.load %arg3[%c8_220, %c0_221, %c0_222] : memref<30x8x128xf32, #tpu.memory_space<vmem>>, vector<1x8x128xf32>
    %332 = vector.shape_cast %331 : vector<1x8x128xf32> to vector<8x128xf32>
    %c3_223 = arith.constant 3 : index
    %c0_224 = arith.constant 0 : index
    %c0_225 = arith.constant 0 : index
    %333 = vector.load %arg3[%c3_223, %c0_224, %c0_225] : memref<30x8x128xf32, #tpu.memory_space<vmem>>, vector<1x8x128xf32>
    %334 = vector.shape_cast %333 : vector<1x8x128xf32> to vector<8x128xf32>
    %335 = arith.select %283, %332, %334 : vector<8x128xi1>, vector<8x128xf32>
    %cst_226 = arith.constant 1.000000e+00 : f32
    %336 = vector.broadcast %cst_226 : f32 to vector<8x128xf32>
    %337 = arith.select %6, %335, %336 : vector<8x128xi1>, vector<8x128xf32>
    %338 = math.sqrt %316 : vector<8x128xf32>
    %339 = math.sqrt %330 : vector<8x128xf32>
    %340 = arith.subf %338, %339 : vector<8x128xf32>
    %341 = math.sqrt %323 : vector<8x128xf32>
    %342 = math.sqrt %337 : vector<8x128xf32>
    %343 = arith.subf %341, %342 : vector<8x128xf32>
    %344 = arith.mulf %340, %340 : vector<8x128xf32>
    %345 = arith.mulf %343, %343 : vector<8x128xf32>
    %346 = arith.addf %344, %345 : vector<8x128xf32>
    %c9_227 = arith.constant 9 : index
    %c0_228 = arith.constant 0 : index
    %c0_229 = arith.constant 0 : index
    %347 = vector.load %arg2[%c9_227, %c0_228, %c0_229] : memref<30x8x128xf32, #tpu.memory_space<vmem>>, vector<1x8x128xf32>
    %348 = vector.shape_cast %347 : vector<1x8x128xf32> to vector<8x128xf32>
    %c4_230 = arith.constant 4 : index
    %c0_231 = arith.constant 0 : index
    %c0_232 = arith.constant 0 : index
    %349 = vector.load %arg2[%c4_230, %c0_231, %c0_232] : memref<30x8x128xf32, #tpu.memory_space<vmem>>, vector<1x8x128xf32>
    %350 = vector.shape_cast %349 : vector<1x8x128xf32> to vector<8x128xf32>
    %351 = arith.select %283, %348, %350 : vector<8x128xi1>, vector<8x128xf32>
    %352 = arith.subf %351, %284 : vector<8x128xf32>
    %353 = arith.mulf %352, %352 : vector<8x128xf32>
    %354 = arith.addf %309, %346 : vector<8x128xf32>
    %cst_233 = arith.constant 5.000000e+00 : f32
    %355 = vector.broadcast %cst_233 : f32 to vector<8x128xf32>
    %356 = arith.mulf %355, %354 : vector<8x128xf32>
    %357 = arith.addf %356, %353 : vector<8x128xf32>
    %358 = arith.addf %357, %164 : vector<8x128xf32>
    %359 = arith.mulf %8, %358 : vector<8x128xf32>
    %cst_234 = arith.constant 5.000000e-01 : f32
    %360 = vector.broadcast %cst_234 : f32 to vector<8x128xf32>
    %361 = arith.mulf %360, %12 : vector<8x128xf32>
    %362 = arith.mulf %361, %23 : vector<8x128xf32>
    %363 = arith.addf %359, %362 : vector<8x128xf32>
    %c0_235 = arith.constant 0 : index
    %c0_236 = arith.constant 0 : index
    %c0_237 = arith.constant 0 : index
    %364 = vector.load %arg4[%c0_235, %c0_236, %c0_237] : memref<1x8x128xf32, #tpu.memory_space<vmem>>, vector<1x8x128xf32>
    %365 = vector.shape_cast %363 : vector<8x128xf32> to vector<1x8x128xf32>
    %366 = arith.addf %364, %365 : vector<1x8x128xf32>
    %c0_238 = arith.constant 0 : index
    %c0_239 = arith.constant 0 : index
    %c0_240 = arith.constant 0 : index
    %367 = vector.load %arg4[%c0_238, %c0_239, %c0_240] : memref<1x8x128xf32, #tpu.memory_space<vmem>>, vector<1x8x128xf32>
    tpu.vector_store %arg4[%c0_238, %c0_239, %c0_240], %366 {strides = array<i32>} : memref<1x8x128xf32, #tpu.memory_space<vmem>>, vector<1x8x128xf32>,
    return
  }
  func.func @transform_0(%arg0: i32, %arg1: i32) -> (i32, i32, i32) {
    %c1_i32 = arith.constant 1 : i32
    %0 = arith.muli %arg0, %c1_i32 : i32
    %1 = arith.addi %0, %arg1 : i32
    %c0_i32 = arith.constant 0 : i32
    %c0_i32_0 = arith.constant 0 : i32
    %c0_i32_1 = arith.constant 0 : i32
    return %c0_i32, %c0_i32_0, %1 : i32, i32, i32
  }
  func.func @transform_1(%arg0: i32, %arg1: i32) -> (i32, i32, i32) {
    %c1_i32 = arith.constant 1 : i32
    %0 = arith.muli %arg0, %c1_i32 : i32
    %1 = arith.addi %0, %arg1 : i32
    %c0_i32 = arith.constant 0 : i32
    %c0_i32_0 = arith.constant 0 : i32
    %c0_i32_1 = arith.constant 0 : i32
    return %c0_i32, %c0_i32_0, %1 : i32, i32, i32
  }
  func.func @transform_2(%arg0: i32, %arg1: i32) -> (i32, i32, i32) {
    %c0_i32 = arith.constant 0 : i32
    %c0_i32_0 = arith.constant 0 : i32
    %c0_i32_1 = arith.constant 0 : i32
    return %arg0, %c0_i32, %c0_i32_0 : i32, i32, i32
  }
}

</mosaic_0001>

<bundles_post_ra>
// kernel: yolo_loss.1
= control target key start
LH: loop header
LB: loop body
LE: loop exit
PB: predicated region body
PF: predicated region fallthrough
CT: control target
= control target key end

     0   :  { %s814_s0 = inlined_call_operand.vmem [shape: f32[30,8,128], index: 0, kind: input, shape index: {}]   ;;  %s815_s1 = inlined_call_operand.vmem [shape: f32[30,8,128], index: 1, kind: input, shape index: {}]   ;;  %s816_s2 = inlined_call_operand.vmem [shape: f32[1,8,128], index: 2, kind: output, shape index: {}]  }
   0x1   :  { %v391_v0 = vld [vmem:[%s814_s0 + $0x50] sm:$0xff]  ;;  %v393_v2 = vld [vmem:[%s814_s0 + $0x58] sm:$0xff]  ;;  %v395_v6 = vld [vmem:[%s814_s0 + $0x60] sm:$0xff] }
   0x2   :  { %v392_v1 = vld [vmem:[%s815_s1 + $0x50] sm:$0xff]  ;;  %v394_v3 = vld [vmem:[%s815_s1 + $0x58] sm:$0xff]  ;;  %v396_v7 = vld [vmem:[%s815_s1 + $0x60] sm:$0xff] }
   0x3   :  { %v73_v4 = vsub.f32 %v391_v0, %v392_v1  ;;  %v80_v5 = vsub.f32 %v393_v2, %v394_v3  ;;  %v397_v8 = vld [vmem:[%s814_s0 + $0x68] sm:$0xff]  ;;  %v87_v10 = vsub.f32 %v395_v6, %v396_v7  ;;  %v399_v11 = vld [vmem:[%s814_s0 + $0x70] sm:$0xff]  ;;  %v401_v16 = vld [vmem:[%s814_s0 + $0x78] sm:$0xff] }
   0x4   :  { %v398_v9 = vld [vmem:[%s815_s1 + $0x68] sm:$0xff]  ;;  %v400_v12 = vld [vmem:[%s815_s1 + $0x70] sm:$0xff]  ;;  %v402_v17 = vld [vmem:[%s815_s1 + $0x78] sm:$0xff] }
   0x5   :  { %v74_v13 = vmul.f32 %v73_v4, %v73_v4  ;;  %v81_v14 = vmul.f32 %v80_v5, %v80_v5  ;;  %v94_v15 = vsub.f32 %v397_v8, %v398_v9  ;;  %v513_v18 = vld [vmem:[%s815_s1 + $0x10] sm:$0xff]  ;;  %v101_v19 = vsub.f32 %v399_v11, %v400_v12  ;;  %v518_v20 = vld [vmem:[%s815_s1 + $0x18] sm:$0xff]  ;;  %v534_v25 = vld [vmem:[%s815_s1] sm:$0xff] }
   0x6   :  { %v523_v21 = vld [vmem:[%s814_s0 + $0x10] sm:$0xff]  ;;  %v528_v22 = vld [vmem:[%s814_s0 + $0x18] sm:$0xff]  ;;  %v227_v23 = vmul.f32 0.5, %v513_v18  ;;  %v88_v24 = vmul.f32 %v87_v10, %v87_v10  ;;  %v539_v26 = vld [vmem:[%s815_s1 + $0x8] sm:$0xff]  ;;  %v228_v28 = vmul.f32 0.5, %v518_v20  ;;  %v108_v36 = vsub.f32 %v401_v16, %v402_v17 }
   0x7   :  { %v544_v27 = vld [vmem:[%s814_s0] sm:$0xff]  ;;  %v229_v29 = vmul.f32 0.5, %v523_v21  ;;  %v82_v30 = vadd.f32 %v81_v14, %v74_v13  ;;  %v95_v31 = vmul.f32 %v94_v15, %v94_v15  ;;  %v218_v33 = vmul.f32 0.14285715, %v534_v25  ;;  %v556_v35 = vld [vmem:[%s814_s0 + $0x8] sm:$0xff]  ;;  %v572_v50 = vld [vmem:[%s815_s1 + $0x30] sm:$0xff] }
   0x8   :  { %v403_v32 = vld [vmem:[%s814_s0 + $0x80] sm:$0xff]  ;;  %v221_v34 = vmul.f32 0.14285715, %v539_v26  ;;  %v223_v38 = vmul.f32 0.14285715, %v544_v27  ;;  %v230_v40 = vmul.f32 0.5, %v528_v22  ;;  %v102_v41 = vmul.f32 %v101_v19, %v101_v19 }
   0x9   :  { %v404_v37 = vld [vmem:[%s815_s1 + $0x80] sm:$0xff]  ;;  %v226_v39 = vmul.f32 0.14285715, %v556_v35  ;;  %v231_v42 = vsub.f32 %v218_v33, %v227_v23  ;;  %v237_v44 = vadd.f32 %v227_v23, %v218_v33  ;;  %v567_v45 = vld [vmem:[%s815_s1 + $0x28] sm:$0xff]  ;;  %v89_v52 = vadd.f32 %v88_v24, %v82_v30  ;;  %v582_v55 = vld [vmem:[%s815_s1 + $0x38] sm:$0xff] }
   0xa   :  { %v234_v43 = vsub.f32 %v221_v34, %v228_v28  ;;  %v232_v46 = vsub.f32 %v223_v38, %v229_v29  ;;  %v238_v48 = vadd.f32 %v229_v29, %v223_v38  ;;  %v240_v49 = vadd.f32 %v228_v28, %v221_v34  ;;  %v577_v51 = vld [vmem:[%s814_s0 + $0x28] sm:$0xff]  ;;  %v587_v56 = vld [vmem:[%s815_s1 + $0x40] sm:$0xff]  ;;  %v593_v58 = vld [vmem:[%s814_s0 + $0x30] sm:$0xff] }
   0xb   :  { %v235_v47 = vsub.f32 %v226_v39, %v230_v40  ;;  %v115_v53 = vsub.f32 %v403_v32, %v404_v37  ;;  %v241_v54 = vadd.f32 %v230_v40, %v226_v39  ;;  %v265_v57 = vmul.f32 0.14285715, %v567_v45  ;;  %v598_v62 = vld [vmem:[%s814_s0 + $0x38] sm:$0xff]  ;;  %v603_v63 = vld [vmem:[%s814_s0 + $0x40] sm:$0xff]  ;;  %v405_v39 = vld [vmem:[%s814_s0 + $0x88] sm:$0xff] }
   0xc   :  { %v233_v59 = vmax.f32 %v231_v42, %v232_v46  ;;  %v239_v61 = vmin.f32 %v237_v44, %v238_v48  ;;  %v268_v0 = vmul.f32 0.14285715, %v572_v50  ;;  %v248_v2 = vmul.f32 %v518_v20, %v513_v18  ;;  %v619_v28 = vld [vmem:[%s815_s1 + $0x20] sm:$0xff]  ;;  %v406_v40 = vld [vmem:[%s815_s1 + $0x88] sm:$0xff] }
   0xd   :  { %v236_v60 = vmax.f32 %v234_v43, %v235_v47  ;;  %v242_v1 = vmin.f32 %v240_v49, %v241_v54  ;;  %v249_v3 = vmul.f32 %v528_v22, %v523_v21  ;;  %v271_v4 = vmul.f32 0.14285715, %v577_v51 }
   0xe   :  { %v243_v5 = vsub.f32 %v239_v61, %v233_v59  ;;  %v274_v6 = vmul.f32 0.14285715, %v593_v58  ;;  %v275_v7 = vmul.f32 0.5, %v582_v55  ;;  %v276_v8 = vmul.f32 0.5, %v587_v56  ;;  %v407_v61 = vld [vmem:[%s814_s0 + $0x90] sm:$0xff] }
   0xf   :  { %v96_v9 = vadd.f32 %v95_v31, %v89_v52  ;;  %v245_v10 = vsub.f32 %v242_v1, %v236_v60  ;;  %v277_v11 = vmul.f32 0.5, %v598_v62  ;;  %v278_v12 = vmul.f32 0.5, %v603_v63 }
  0x10   :  { %v244_v13 = vmax.f32 %v243_v5, 0.0  ;;  %v279_v14 = vsub.f32 %v265_v57, %v275_v7  ;;  %v282_v15 = vsub.f32 %v268_v0, %v276_v8  ;;  %v285_v16 = vadd.f32 %v275_v7, %v265_v57  ;;  %v409_v5 = vld [vmem:[%s814_s0 + $0x98] sm:$0xff] }
  0x11   :  { %v246_v17 = vmax.f32 %v245_v10, 0.0  ;;  %v250_v19 = vadd.f32 %v249_v3, %v248_v2  ;;  %v280_v23 = vsub.f32 %v271_v4, %v277_v11  ;;  %v283_v24 = vsub.f32 %v274_v6, %v278_v12 }
  0x12   :  { %v109_v29 = vmul.f32 %v108_v36, %v108_v36  ;;  %v286_v30 = vadd.f32 %v277_v11, %v271_v4  ;;  %v288_v31 = vadd.f32 %v276_v8, %v268_v0  ;;  %v289_v32 = vadd.f32 %v278_v12, %v274_v6  ;;  %v408_v0 = vld [vmem:[%s815_s1 + $0x90] sm:$0xff]  ;;  %v410_v6 = vld [vmem:[%s815_s1 + $0x98] sm:$0xff]  ;;  %v411_v11 = vld [vmem:[%s814_s0 + $0xa0] sm:$0xff] }
  0x13   :  { %v103_v33 = vadd.f32 %v102_v41, %v96_v9  ;;  %v247_v34 = vmul.f32 %v246_v17, %v244_v13  ;;  %v281_v37 = vmax.f32 %v279_v14, %v280_v23  ;;  %v284_v38 = vmax.f32 %v282_v15, %v283_v24  ;;  %v412_v12 = vld [vmem:[%s815_s1 + $0xa0] sm:$0xff]  ;;  %v414_v17 = vld [vmem:[%s815_s1 + $0xa8] sm:$0xff] }
  0x14   :  { %v287_v42 = vmin.f32 %v285_v16, %v286_v30  ;;  %v290_v43 = vmin.f32 %v288_v31, %v289_v32  ;;  %v296_v36 = vmul.f32 %v587_v56, %v582_v55  ;;  %v297_v44 = vmul.f32 %v603_v63, %v598_v62  ;;  %v413_v16 = vld [vmem:[%s814_s0 + $0xa8] sm:$0xff]  ;;  %v415_v30 = vld [vmem:[%s814_s0 + $0xb0] sm:$0xff] }
  0x15   :  { %vm52_vm0 = vcmp.eq.f32.partialorder %v619_v28, 1.0  ;;  %v251_v41 = vsub.f32 %v250_v19, %v247_v34  ;;  %v110_v48 = vadd.f32 %v109_v29, %v103_v33  ;;  %v116_v49 = vmul.f32 %v115_v53, %v115_v53  ;;  %v416_v31 = vld [vmem:[%s815_s1 + $0xb0] sm:$0xff] }
  0x16   :  { %v291_v46 = vsub.f32 %v287_v42, %v281_v37  ;;  %v293_v47 = vsub.f32 %v290_v43, %v284_v38  ;;  %v122_v52 = vsub.f32 %v405_v39, %v406_v40  ;;  %v298_v60 = vadd.f32 %v297_v44, %v296_v36  ;;  %v417_v40 = vld [vmem:[%s814_s0 + $0xb8] sm:$0xff] }
  0x17   :  { %v252_v54 = vsel %vm52_vm0, %v251_v41, 1.0  ;;  %v117_v2 = vadd.f32 %v116_v49, %v110_v48  ;;  %v129_v53 = vsub.f32 %v407_v61, %v408_v0  ;;  %v136_v10 = vsub.f32 %v409_v5, %v410_v6  ;;  %v418_v42 = vld [vmem:[%s815_s1 + $0xb8] sm:$0xff]  ;;  %v423_v0 = vld [vmem:[%s814_s0 + $0xd0] sm:$0xff] }
  0x18   :  { %v292_v57 = vmax.f32 %v291_v46, 0.0  ;;  %v294_v59 = vmax.f32 %v293_v47, 0.0  ;;  %446 = vrcp.f32 %v252_v54  ;;  %v123_v3 = vmul.f32 %v122_v52, %v122_v52  ;;  %v419_v46 = vld [vmem:[%s814_s0 + $0xc0] sm:$0xff] }
  0x19   :  { %v130_v9 = vmul.f32 %v129_v53, %v129_v53  ;;  %v137_v14 = vmul.f32 %v136_v10, %v136_v10  ;;  %v143_v15 = vsub.f32 %v411_v11, %v412_v12  ;;  %v150_v29 = vsub.f32 %v413_v16, %v414_v17  ;;  %v420_v47 = vld [vmem:[%s815_s1 + $0xc0] sm:$0xff] }
  0x1a   :  { %v295_v1 = vmul.f32 %v294_v59, %v292_v57  ;;  %v124_v8 = vadd.f32 %v123_v3, %v117_v2  ;;  %v157_v39 = vsub.f32 %v415_v30, %v416_v31  ;;  %v164_v41 = vsub.f32 %v417_v40, %v418_v42  ;;  %v425_v2 = vld [vmem:[%s814_s0 + $0xd8] sm:$0xff]  ;;  %v429_v42 = vld [vmem:[%s814_s0 + $0xe8] sm:$0xff] }
  0x1b   :  { %v144_v24 = vmul.f32 %v143_v15, %v143_v15  ;;  %v151_v38 = vmul.f32 %v150_v29, %v150_v29  ;;  %v171_v59 = vsub.f32 %v419_v46, %v420_v47  ;;  %v426_v3 = vld [vmem:[%s815_s1 + $0xd8] sm:$0xff]  ;;  %vm55_vm10 = vcmp.eq.f32.partialorder %v619_v28, 0.0 }
  0x1c   :  { %v299_v4 = vsub.f32 %v298_v60, %v295_v1  ;;  %v131_v13 = vadd.f32 %v130_v9, %v124_v8  ;;  %v158_v44 = vmul.f32 %v157_v39, %v157_v39  ;;  %v422_v60 = vld [vmem:[%s815_s1 + $0xc8] sm:$0xff]  ;;  %v192_v6 = vsub.f32 %v425_v2, %v426_v3  ;;  %v428_v8 = vld [vmem:[%s815_s1 + $0xe0] sm:$0xff] }
  0x1d   :  { %v388_v9 = vld [vmem:[%s814_s0 + $0x20] sm:$0xff]  ;;  %v389_v39 = vld [vmem:[%s814_s0 + $0x48] sm:$0xff] }
  0x1e   :  { %v300_v7 = vsel %vm52_vm0, %v299_v4, 1.0  ;;  %v138_v23 = vadd.f32 %v137_v14, %v131_v13  ;;  %v60_v14 = vsub.f32 %v388_v9, %v619_v28  ;;  %v193_v17 = vmul.f32 %v192_v6, %v192_v6 }
  0x1f   :  { %448 = vrcp.f32 %v300_v7  ;;  %v427_v7 = vld [vmem:[%s814_s0 + $0xe0] sm:$0xff] }
  0x20   :  { %v145_v37 = vadd.f32 %v144_v24, %v138_v23  ;;  %v199_v16 = vsub.f32 %v427_v7, %v428_v8 }
  0x25   :  { %v447_v19 = vpop.eup %446 }
  0x26   :  { %v666_v32 = vmul.f32 %v447_v19, %v247_v34  ;;  %v152_v34 = vadd.f32 %v151_v38, %v145_v37 }
  0x2c   :  { %v449_v33 = vpop.eup %448 }
  0x2d   :  { %v674_v43 = vmul.f32 %v449_v33, %v295_v1  ;;  %v424_v1 = vld [vmem:[%s815_s1 + $0xd0] sm:$0xff] }
  0x2e   :  { %v185_v53 = vsub.f32 %v423_v0, %v424_v1 }
  0x2f   :  { %vm678_vm1 = vcmp.le.f32.partialorder %v666_v32, %v674_v43 }
  0x30   :  { %v314_v48 = vsel %vm678_vm1, %v598_v62, %v523_v21  ;;  %v316_v49 = vsel %vm678_vm1, %v603_v63, %v528_v22  ;;  %v318_v54 = vsel %vm678_vm1, %v582_v55, %v513_v18  ;;  %v320_v22 = vsel %vm678_vm1, %v587_v56, %v518_v20  ;;  %v421_v55 = vld [vmem:[%s814_s0 + $0xc8] sm:$0xff] }
  0x31   :  { %v315_v52 = vsel %vm52_vm0, %v314_v48, 1.0  ;;  %v704_v57 = vsel %vm52_vm0, %v316_v49, 1.0  ;;  %v708_v21 = vsel %vm52_vm0, %v318_v54, 1.0  ;;  %v159_v62 = vadd.f32 %v158_v44, %v152_v34  ;;  %v430_v34 = vld [vmem:[%s815_s1 + $0xe8] sm:$0xff] }
  0x32   :  { %450 = vrsqrt.f32 %v315_v52  ;;  %v165_v63 = vmul.f32 %v164_v41, %v164_v41  ;;  %v716_v18 = vsel %vm52_vm0, %v320_v22, 1.0  ;;  %v172_v56 = vmul.f32 %v171_v59, %v171_v59 }
  0x33   :  { %452 = vrsqrt.f32 %v708_v21  ;;  %v178_v61 = vsub.f32 %v421_v55, %v422_v60  ;;  %v305_v10 = vsel %vm678_vm1, %v577_v51, %v544_v27  ;;  %v306_v11 = vsel %vm678_vm1, %v567_v45, %v534_v25 }
  0x34   :  { %454 = vrsqrt.f32 %v704_v57  ;;  %v166_v20 = vadd.f32 %v165_v63, %v159_v62  ;;  %v308_v12 = vsel %vm678_vm1, %v593_v58, %v556_v35  ;;  %v309_v13 = vsel %vm678_vm1, %v572_v50, %v539_v26  ;;  %v390_v50 = vld [vmem:[%s815_s1 + $0x48] sm:$0xff] }
  0x35   :  { %456 = vrsqrt.f32 %v716_v18  ;;  %v179_v5 = vmul.f32 %v178_v61, %v178_v61  ;;  %v186_v15 = vmul.f32 %v185_v53, %v185_v53  ;;  %vm324_vm2 = vcmp.eq.f32.partialorder %v315_v52, inf }
  0x36   :  { %v173_v4 = vadd.f32 %v172_v56, %v166_v20  ;;  %v327_v19 = vand.u32 2147483648, %v315_v52  ;;  %v307_v25 = vsub.f32 %v305_v10, %v306_v11  ;;  %v310_v45 = vsub.f32 %v308_v12, %v309_v13 }
  0x37   :  { %vm326_vm3 = vcmp.eq.f32.partialorder %v315_v52, 0.0  ;;  %vm331_vm4 = vcmp.eq.f32.partialorder %v708_v21, inf  ;;  %vm333_vm5 = vcmp.eq.f32.partialorder %v708_v21, 0.0  ;;  %v334_v26 = vand.u32 2147483648, %v708_v21 }
  0x38   :  { %v180_v51 = vadd.f32 %v179_v5, %v173_v4  ;;  %vm339_vm6 = vcmp.eq.f32.partialorder %v704_v57, inf  ;;  %vm341_vm7 = vcmp.eq.f32.partialorder %v704_v57, 0.0  ;;  %v342_v30 = vand.u32 2147483648, %v704_v57 }
  0x39   :  { %vm346_vm8 = vcmp.eq.f32.partialorder %v716_v18, inf  ;;  %v349_v38 = vand.u32 2147483648, %v716_v18  ;;  %vm348_vm9 = vcmp.eq.f32.partialorder %v716_v18, 0.0  ;;  %v65_v46 = vsub.f32 %v389_v39, %v390_v50 }
  0x3a   :  { %v187_v40 = vadd.f32 %v186_v15, %v180_v51  ;;  %v311_v47 = vmul.f32 %v307_v25, %v307_v25  ;;  %v206_v63 = vsub.f32 %v429_v42, %v430_v34  ;;  %v355_v55 = vsel %vm678_vm1, %v389_v39, %v388_v9 }
  0x3b   :  { %v200_v20 = vmul.f32 %v199_v16, %v199_v16  ;;  %v67_v2 = vmul.f32 %v65_v46, %v65_v46  ;;  %v458_v5 = vmov 0.0  }
  0x3c   :  { %v194_v60 = vadd.f32 %v193_v17, %v187_v40  ;;  %v207_v53 = vmul.f32 %v206_v63, %v206_v63  ;;  %v386_v11 = vsel %vm52_vm0, 1.0, %v458_v5 }
  0x3e   :  { %v201_v3 = vadd.f32 %v200_v20, %v194_v60 }
  0x3f   :  { %v451_v27 = vpop.eup %450 }
  0x40   :  { %v323_v23 = vmul.f32 %v451_v27, %v315_v52  ;;  %v453_v24 = vpop.eup %452  ;;  %v208_v7 = vadd.f32 %v207_v53, %v201_v3 }
  0x41   :  { %v455_v35 = vpop.eup %454  ;;  %v330_v29 = vmul.f32 %v453_v24, %v708_v21 }
  0x42   :  { %v325_v58 = vsel %vm324_vm2, %v315_v52, %v323_v23  ;;  %v457_v31 = vpop.eup %456  ;;  %v338_v37 = vmul.f32 %v455_v35, %v704_v57  ;;  %v312_v52 = vmul.f32 %v310_v45, %v310_v45 }
  0x43   :  { %v328_v33 = vsel %vm326_vm3, %v327_v19, %v325_v58  ;;  %v332_v44 = vsel %vm331_vm4, %v708_v21, %v330_v29  ;;  %v345_v41 = vmul.f32 %v457_v31, %v716_v18  ;;  %v304_v21 = vsel %vm678_vm1, %v674_v43, %v666_v32 }
  0x44   :  { %v335_v48 = vsel %vm333_vm5, %v334_v26, %v332_v44  ;;  %v340_v49 = vsel %vm339_vm6, %v704_v57, %v338_v37  ;;  %v313_v57 = vadd.f32 %v312_v52, %v311_v47  ;;  %v356_v1 = vsub.f32 %v355_v55, %v304_v21 }
  0x45   :  { %v336_v54 = vsub.f32 %v328_v33, %v335_v48  ;;  %v343_v22 = vsel %vm341_vm7, %v342_v30, %v340_v49  ;;  %v347_v62 = vsel %vm346_vm8, %v716_v18, %v345_v41  ;;  %v66_v18 = vmul.f32 %v60_v14, %v60_v14 }
  0x46   :  { %v350_v59 = vsel %vm348_vm9, %v349_v38, %v347_v62  ;;  %v387_v32 = vsel %vm55_vm10, 1.0, %v458_v5  ;;  %v357_v43 = vmul.f32 %v356_v1, %v356_v1 }
  0x47   :  { %v351_v56 = vsub.f32 %v343_v22, %v350_v59  ;;  %v352_v61 = vmul.f32 %v336_v54, %v336_v54  ;;  %v68_v36 = vadd.f32 %v67_v2, %v66_v18  ;;  %v363_v9 = vmul.f32 0.5, %v387_v32 }
  0x49   :  { %v353_v0 = vmul.f32 %v351_v56, %v351_v56  ;;  %v364_v13 = vmul.f32 %v363_v9, %v68_v36 }
  0x4b   :  { %v354_v4 = vadd.f32 %v353_v0, %v352_v61 }
  0x4d   :  { %v358_v6 = vadd.f32 %v354_v4, %v313_v57 }
  0x4f   :  { %v359_v8 = vmul.f32 5.0, %v358_v6 }
  0x51   :  { %v360_v10 = vadd.f32 %v359_v8, %v357_v43 }
  0x53   :  { %v361_v12 = vadd.f32 %v360_v10, %v208_v7 }
  0x55   :  { %v362_v15 = vmul.f32 %v386_v11, %v361_v12 }
  0x57   :  { %v365_v14 = vadd.f32 %v364_v13, %v362_v15 }
  0x59   :  { %368 = vst [vmem:[%s816_s2] sm:$0xff] %v365_v14 }

</bundles_post_ra>
